<compile_context>
chip_gen: v7x
topology: tpu7x:2x2x1
jax: 0.10.0
libtpu: 0.0.40
codegen_flags: <defaults>
</compile_context>

<pallas_src>
import jax
import jax.numpy as jnp
from jax.experimental import pallas as pl
from jax.experimental.pallas import tpu as pltpu


def _embed_kernel(x_ref, w_ref, pb_ref, o_ref):
    # x_ref : (1, TM, Kp)  bf16 im2col patch-matrix tile (lane dim = Kp, >=128)
    # w_ref : (Kp, Hp)     bf16 conv weight as one (K, hidden) matrix, resident
    # pb_ref: (Mpad, Hp)   f32 position embeddings + conv bias, fully resident
    # o_ref : (1, TM, Hp)
    tm = x_ref.shape[1]
    j = pl.program_id(1)
    # Single full-depth MXU matmul per grid step; accumulation happens inside
    # the MXU (in-place MRB on v7x), result popped once in f32.
    acc = jnp.dot(x_ref[0], w_ref[...], preferred_element_type=jnp.float32)
    # Row-index the resident pos-emb table for this tile (f32 add, cast at store).
    row = pl.multiple_of(j * tm, 8)
    o_ref[0] = (acc + pb_ref[pl.ds(row, tm), :]).astype(o_ref.dtype)


def _round_up(v, m):
    return ((v + m - 1) // m) * m


def embeddings_forward(x, conv_w, conv_b, pos_emb, patch_size):
    """x: (B, C, H, W) NCHW.  conv_w: (hidden, C, P, P).  conv_b: (hidden,).
    pos_emb: (1, n_patches, hidden).  Returns (embeddings, features=None)."""
    B, C, H, W = x.shape
    P = int(patch_size)
    hidden = conv_w.shape[0]
    assert H % P == 0 and W % P == 0
    gh, gw = H // P, W // P
    M = gh * gw                      # n_patches
    K = C * P * P                    # contraction depth of the fused matmul

    # Lane-dense paddings.
    Hp = _round_up(hidden, 128)
    Kp = _round_up(K, 128)

    # Tile over patches: aim for 2 parallel steps per image (v7x megacore),
    # cap the tile so blocks stay modest at very large resolutions.
    TM = min(512, max(8, _round_up(-(-M // 2), 8)))
    Mpad = _round_up(M, TM)
    n_blocks = Mpad // TM

    # One-time im2col (reshape + transpose in bf16, done by XLA once):
    # (B,C,H,W) -> (B,C,gh,P,gw,P) -> (B,gh,gw,C,P,P) -> (B, M, K).
    xp = x.astype(jnp.bfloat16).reshape(B, C, gh, P, gw, P)
    xp = xp.transpose(0, 2, 4, 1, 3, 5).reshape(B, M, K)
    if Kp != K or Mpad != M:
        xp = jnp.pad(xp, ((0, 0), (0, Mpad - M), (0, Kp - K)))

    # Weight -> single (K, hidden) matrix in bf16 (tiny, done once).
    w2 = jnp.transpose(conv_w, (1, 2, 3, 0)).reshape(K, hidden).astype(jnp.bfloat16)
    # Fold the conv bias into the position embeddings (one fewer kernel input).
    posb = (pos_emb.astype(jnp.float32)
            + conv_b.astype(jnp.float32)[None, None, :]).reshape(M, hidden)
    if Kp != K or Hp != hidden:
        w2 = jnp.pad(w2, ((0, Kp - K), (0, Hp - hidden)))
    if Mpad != M or Hp != hidden:
        posb = jnp.pad(posb, ((0, Mpad - M), (0, Hp - hidden)))

    out = pl.pallas_call(
        _embed_kernel,
        out_shape=jax.ShapeDtypeStruct((B, Mpad, Hp), x.dtype),
        grid_spec=pltpu.PrefetchScalarGridSpec(
            num_scalar_prefetch=0,
            grid=(B, n_blocks),
            in_specs=[
                # Patch-matrix tile: lane dim = Kp (full extent, multiple of 128).
                pl.BlockSpec((1, TM, Kp), lambda b, j: (b, j, 0)),
                # Weight: constant index_map -> fetched once, kept resident.
                pl.BlockSpec((Kp, Hp), lambda b, j: (0, 0)),
                # pos-emb + bias: constant index_map -> resident, no per-batch re-DMA.
                pl.BlockSpec((Mpad, Hp), lambda b, j: (0, 0)),
            ],
            out_specs=pl.BlockSpec((1, TM, Hp), lambda b, j: (b, j, 0)),
        ),
        compiler_params=pltpu.CompilerParams(
            # Both axes independent -> megacore (v7x) can split the patch-tile
            # axis even when batch == 1.
            dimension_semantics=("parallel", "parallel"),
            # Blocks are small (~5 MiB at ViT-B/16 incl. double buffering);
            # 32 MiB is safe on v5e/v6e and within v7x's 64 MiB physical VMEM.
            vmem_limit_bytes=32 * 1024 * 1024,
        ),
    )(xp, w2, posb)

    emb = out[:, :M, :hidden]

    # Dropout is identity at inference time.
    # TODO(synk): training-mode dropout (pltpu.prng_random_bits mask) not implemented.
    # TODO(synk): hybrid ResNetV2 backbone path not implemented (features=None).
    features = None
    return emb, features


if __name__ == "__main__":
    # Small config consistent with the module: img_size=16, patch=4,
    # in_channels=4, hidden_size=32  ->  n_patches = (16/4)*(16/4) = 16.
    B, C, H, W = 2, 4, 16, 16
    P = 4
    hidden = 32
    n_patches = (H // P) * (W // P)

    key = jax.random.PRNGKey(0)
    kx, kw, kb, kp = jax.random.split(key, 4)
    x = jax.random.normal(kx, (B, C, H, W), dtype=jnp.float32)
    conv_w = jax.random.normal(kw, (hidden, C, P, P), dtype=jnp.float32) * 0.05
    conv_b = jax.random.normal(kb, (hidden,), dtype=jnp.float32) * 0.05
    # PyTorch inits position_embeddings to zeros; use small random values so
    # the addition path is actually exercised.
    pos_emb = jax.random.normal(kp, (1, n_patches, hidden), dtype=jnp.float32) * 0.02

    emb, feats = embeddings_forward(x, conv_w, conv_b, pos_emb, P)
    emb = jax.block_until_ready(emb)

    # Reference: plain-JAX strided conv + flatten/transpose + pos add (f32).
    ref_conv = jax.lax.conv_general_dilated(
        x, conv_w, window_strides=(P, P), padding="VALID",
        dimension_numbers=("NCHW", "OIHW", "NCHW"))
    ref_conv = ref_conv + conv_b[None, :, None, None]
    ref = ref_conv.reshape(B, hidden, n_patches).transpose(0, 2, 1) + pos_emb

    assert emb.shape == (B, n_patches, hidden)
    assert feats is None
    # bf16 MXU operands with f32 accumulation -> slightly looser tolerance.
    assert jnp.allclose(emb, ref, atol=2e-2, rtol=2e-2)
    print("KERNEL_OK")
</pallas_src>

<mosaic_0001>
module attributes {stable_mosaic.version = 11 : i64} {
  func.func @_embed_kernel(%arg0: i32, %arg1: i32, %arg2: memref<1x8x128xbf16, #tpu.memory_space<vmem>>, %arg3: memref<128x128xbf16, #tpu.memory_space<vmem>>, %arg4: memref<16x128xf32, #tpu.memory_space<vmem>>, %arg5: memref<1x8x128xf32, #tpu.memory_space<vmem>>) attributes {dimension_semantics = [#tpu.dimension_semantics<parallel>, #tpu.dimension_semantics<parallel>], iteration_bounds = array<i64: 2, 2>, scalar_prefetch = 0 : i64, scratch_operands = 0 : i64, tpu.core_type = #tpu.core_type<tc>, window_params = [{transform_indices = @transform_0, window_bounds = array<i64: 1, 8, 128>}, {pipeline_mode = #tpu.pipeline_mode<synchronous>, transform_indices = @transform_1, window_bounds = array<i64: 128, 128>}, {pipeline_mode = #tpu.pipeline_mode<synchronous>, transform_indices = @transform_2, window_bounds = array<i64: 16, 128>}, {transform_indices = @transform_3, window_bounds = array<i64: 1, 8, 128>}]} {
    %c0 = arith.constant 0 : index
    %c0_0 = arith.constant 0 : index
    %c0_1 = arith.constant 0 : index
    %0 = vector.load %arg2[%c0, %c0_0, %c0_1] : memref<1x8x128xbf16, #tpu.memory_space<vmem>>, vector<1x8x128xbf16>
    %1 = vector.shape_cast %0 : vector<1x8x128xbf16> to vector<8x128xbf16>
    %c0_2 = arith.constant 0 : index
    %c0_3 = arith.constant 0 : index
    %2 = vector.load %arg3[%c0_2, %c0_3] : memref<128x128xbf16, #tpu.memory_space<vmem>>, vector<128x128xbf16>
    %cst = arith.constant dense<0.000000e+00> : vector<8x128xf32>
    %3 = tpu.matmul %1, %2, %cst {dimension_numbers = #tpu.dot_dimension_numbers<[1], [0], [0], [1], [0, 0, 1, 1], [], []>} : vector<8x128xbf16>, vector<128x128xbf16>, vector<8x128xf32> -> vector<8x128xf32>
    %c8_i32 = arith.constant 8 : i32
    %4 = arith.muli %arg1, %c8_i32 : i32
    %5 = tpu.assume_multiple %4, 8 : i32
    %6 = arith.index_cast %5 : i32 to index
    %c0_4 = arith.constant 0 : index
    %7 = vector.load %arg4[%6, %c0_4] : memref<16x128xf32, #tpu.memory_space<vmem>>, vector<8x128xf32>
    %8 = arith.addf %3, %7 : vector<8x128xf32>
    %c0_5 = arith.constant 0 : index
    %c0_6 = arith.constant 0 : index
    %c0_7 = arith.constant 0 : index
    %9 = vector.load %arg5[%c0_5, %c0_6, %c0_7] : memref<1x8x128xf32, #tpu.memory_space<vmem>>, vector<1x8x128xf32>
    %10 = vector.shape_cast %9 : vector<1x8x128xf32> to vector<8x128xf32>
    %11 = vector.shape_cast %8 : vector<8x128xf32> to vector<1x8x128xf32>
    tpu.vector_store %arg5[%c0_5, %c0_6, %c0_7], %11 {strides = array<i32>} : memref<1x8x128xf32, #tpu.memory_space<vmem>>, vector<1x8x128xf32>,
    return
  }
  func.func @transform_0(%arg0: i32, %arg1: i32) -> (i32, i32, i32) {
    %c0_i32 = arith.constant 0 : i32
    %c0_i32_0 = arith.constant 0 : i32
    return %arg0, %arg1, %c0_i32 : i32, i32, i32
  }
  func.func @transform_1(%arg0: i32, %arg1: i32) -> (i32, i32) {
    %c0_i32 = arith.constant 0 : i32
    %c0_i32_0 = arith.constant 0 : i32
    %c0_i32_1 = arith.constant 0 : i32
    return %c0_i32, %c0_i32_0 : i32, i32
  }
  func.func @transform_2(%arg0: i32, %arg1: i32) -> (i32, i32) {
    %c0_i32 = arith.constant 0 : i32
    %c0_i32_0 = arith.constant 0 : i32
    %c0_i32_1 = arith.constant 0 : i32
    return %c0_i32, %c0_i32_0 : i32, i32
  }
  func.func @transform_3(%arg0: i32, %arg1: i32) -> (i32, i32, i32) {
    %c0_i32 = arith.constant 0 : i32
    %c0_i32_0 = arith.constant 0 : i32
    return %arg0, %arg1, %c0_i32 : i32, i32, i32
  }
}

</mosaic_0001>

<bundles_post_ra>
// kernel: tpu_custom_call.1
= control target key start
LH: loop header
LB: loop body
LE: loop exit
PB: predicated region body
PF: predicated region fallthrough
CT: control target
= control target key end

     0   :  { %s1129_s0 = inlined_call_operand.hbm [shape: bf16[2,16,128], index: 0, kind: input, shape index: {}]   ;;  %s1130_s1 = inlined_call_operand.hbm [shape: bf16[128,128], index: 1, kind: input, shape index: {}]   ;;  %s1131_s2 = inlined_call_operand.hbm [shape: f32[16,128], index: 2, kind: input, shape index: {}]   ;;  %s1132_s3 = inlined_call_operand.hbm [shape: f32[2,16,128], index: 3, kind: output, shape index: {}]  }
   0x1   :  { %1139 = sst [smem:[#allocation14_spill]] %s1130_s1 }
   0x2   :  { %1140 = sst [smem:[#allocation15_spill]] %s1131_s2 }
   0x3   :  { %8 = vsyncpa [#allocation3], 0 }
   0x4   :  { %10 = vsyncpa [#allocation3 + $0x1], 0 }
   0x5   :  { %11 = vsyncpa [#allocation6], 0 }
   0x6   :  { %12 = vsyncpa [#allocation4], 0 }
   0x7   :  { %14 = vsyncpa [#allocation4 + $0x1], 0  ;;  %s855_s12 = smov 0   ;;  %s857_s13 = smov 0  }
   0x8   :  { %s859_s14 = smov 0   ;;  %s861_s15 = smov 0  }
   0x9   :  { %s863_s16 = smov 0   ;;  %s865_s17 = smov 0  }
   0xa   :  { %s867_s18 = smov 0   ;;  %s869_s19 = smov 0  }
   0xb LB: > { %s465_s20 = sadd.s32 4294967295, %s823_s19   ;;  %s466_s21 = sadd.s32 4294967294, %s823_s19   ;;  %s823_s19 = sphi %s869_s19, %s20_s19   ;;  %s819_s18 = sphi %s867_s18, %s1165_s18   ;;  %s815_s17 = sphi %s865_s17, %s1164_s17   ;;  %s811_s16 = sphi %s863_s16, %s1163_s16   ;;  %s807_s15 = sphi %s861_s15, %s1162_s15   ;;  %s803_s14 = sphi %s859_s14, %s1161_s14   ;;  %s799_s13 = sphi %s857_s13, %s1160_s13   ;;  %s795_s12 = sphi %s855_s12, %s1159_s12  }
   0xc   : > { %p54_p0 = scmp.ne.s32.totalorder %s799_s13, %s795_s12  ;;  %p901_p1 = scmp.eq.s32.totalorder %s465_s20, 0 }
   0xd   : > { %p128_p2 = scmp.eq.s32.totalorder %s466_s21, 3  ;;  %p467_p4 = scmp.ge.s32.totalorder %s823_s19, 1 }
   0xe   : > { %s1141_s22 = scalar_select %p901_p1, 1, 0 }
   0xf   : > { %p907_p3 = por %p901_p1, %p54_p0  ;;  %p912_p5 = por %p128_p2, %p54_p0 }
  0x10   : > { %p135_p6 = scmp.lt.s32.totalorder %s823_s19, 5  ;;  %s825_s26 = smov [#allocation5]  }
  0x11   : > { %s1142_s23 = scalar_select %p907_p3, 1, 0 }
  0x12   : > { %s1143_s24 = scalar_select %p912_p5, 1, 0 }
  0x13   : > { %p917_p7 = pnand %p467_p4, %p135_p6  ;;  %s147_s27 = sshll.u32 %s825_s26, 4  ;;  %s148_s27 = int_to_ptr.vmem [resolvable:$true] %s147_s27 }
  0x14   : > { %1144 = sst [smem:[#allocation12_spill]] %s1143_s24  ;;  %s826_s29 = smov [#allocation7]  }
  0x15   : > { %s1145_s25 = scalar_select %p917_p7, 1, 0 }
  0x16   : > { %p534_p8 = pneg %p917_p7  ;;  %s160_s30 = sshll.u32 %s826_s29, 4  ;;  %s929_s30 = int_to_ptr.vmem [resolvable:$true] %s160_s30 }
  0x17   : > { %s1147_s1 = sld [smem:[#allocation14_spill]] }
  0x18   : > { %p925_p9 = pnand %p534_p8, %p901_p1 }
  0x1a   : > { %p637_p11 = pneg %p925_p9 }
  0x1d   : > { %s635_s6 = scalar_lea.hbm %s1147_s1, 1024 }
  0x1e   : > { %p636_p10 = scmp.ne.s32.totalorder %s1147_s1, %s635_s6  ;;  %p642_p0 = scmp.lt.u32.totalorder %s635_s6, %s1147_s1 }
  0x20   : > { %p638_p12 = pnand %p637_p11, %p636_p10 }
  0x22   : > { %p639_p13 = pneg %p638_p12 }
  0x24   : > { %p644_p2 = pnand %p642_p0, %p639_p13 }
  0x26   : > { %647 = shalt.err (!%p644_p2)
}
  0x27   : > { %s648_s11 = scalar_lea.vmem %s148_s27, 1024  ;;  %p656_p5 = scmp.lt.s32.totalorder %s148_s27, %s148_s27 }
  0x28   : > { %p649_p4 = scmp.ne.s32.totalorder %s148_s27, %s648_s11  ;;  %p657_p1 = scmp.lt.s32.totalorder %s648_s11, %s648_s11 }
  0x2a   : > { %p651_p6 = pnand %p649_p4, %p637_p11  ;;  %p658_p3 = por %p657_p1, %p656_p5 }
  0x2c   : > { %p652_p8 = pneg %p651_p6 }
  0x2e   : > { %p659_p7 = pnand %p658_p3, %p652_p8 }
  0x30   : > { %662 = shalt.err (!%p659_p7)
}
  0x31   : > { %s827_s21 = smov 64   ;;  %s828_s26 = smov 4  }
  0x32   : > { %537 = dma.hbm_to_vmem [thread:$0]  (!%p925_p9), %s1147_s1, 1024, %s148_s27, [#allocation6], %s827_s21, %s827_s21, %s828_s26  }
  0x33   : > { %s1148_s2 = sld [smem:[#allocation15_spill]] }
  0x39   : > { %s663_s7 = scalar_lea.hbm %s1148_s2, 256 }
  0x3a   : > { %p664_p10 = scmp.ne.s32.totalorder %s1148_s2, %s663_s7  ;;  %p670_p5 = scmp.lt.u32.totalorder %s663_s7, %s1148_s2 }
  0x3c   : > { %p666_p1 = pnand %p664_p10, %p637_p11 }
  0x3e   : > { %p667_p3 = pneg %p666_p1 }
  0x40   : > { %p672_p7 = pnand %p670_p5, %p667_p3 }
  0x42   : > { %675 = shalt.err (!%p672_p7)
}
  0x43   : > { %s676_s27 = scalar_lea.vmem %s929_s30, 256  ;;  %p684_p2 = scmp.lt.s32.totalorder %s929_s30, %s929_s30 }
  0x44   : > { %p677_p12 = scmp.ne.s32.totalorder %s929_s30, %s676_s27  ;;  %p685_p4 = scmp.lt.s32.totalorder %s676_s27, %s676_s27 }
  0x46   : > { %p679_p13 = pnand %p677_p12, %p637_p11  ;;  %p686_p6 = por %p685_p4, %p684_p2 }
  0x48   : > { %p680_p0 = pneg %p679_p13 }
  0x4a   : > { %p687_p8 = pnand %p686_p6, %p680_p0 }
  0x4c   : > { %690 = shalt.err (!%p687_p8)
}
  0x4d   : > { %s829_s21 = smov 128   ;;  %s830_s26 = smov 8  }
  0x4e   : > { %540 = dma.hbm_to_vmem [thread:$0]  (!%p925_p9), %s1148_s2, 256, %s929_s30, [#allocation6], %s829_s21, %s829_s21, %s830_s26  }
  0x4f   : > { %p122_p11 = scmp.eq.s32.totalorder %s465_s20, 3  ;;  %s29_s5 = sadd.s32 1, %s815_s17 }
  0x50   : > { %p30_p10 = scmp.ge.s32.totalorder %s29_s5, 2  ;;  %s32_s6 = sadd.s32 1, %s819_s18 }
  0x51   : > { %p48_p1 = scmp.ne.s32.totalorder %s803_s14, %s799_s13  ;;  %p49_p3 = scmp.eq.s32.totalorder %s823_s19, 0 }
  0x52   : > { %s1167_s5 = smov (%p30_p10, %s29_s5), 0  ;;  %s1169_s6 = smov (!%p30_p10, %s32_s6), %s819_s18 }
  0x53   : > { %1149 = sst [smem:[#allocation13_spill]] %s1167_s5  ;;  %s37_s28 = ssub.s32 %s815_s17, %s1167_s5 }
  0x54   : > { %s41_s7 = sadd.s32 1, %s803_s14  ;;  %p34_p5 = scmp.ge.s32.totalorder %s1169_s6, 2 }
  0x55   : > { %p991_p9 = por %p122_p11, %p48_p1  ;;  %p995_p7 = por %p49_p3, %p48_p1 }
  0x56   : > { %s174_s8 = sand.u32 1, %s803_s14   ;;  %s1171_s6 = smov (%p34_p5, %s1169_s6), 0 }
  0x57   : > { %p551_p12 = scmp.lt.s32.totalorder %s823_s19, 4  ;;  %s471_s9 = sshll.u32 %s174_s8, 2 }
  0x58   : > { %s36_s10 = ssub.s32 %s819_s18, %s1171_s6  ;;  %s472_s27 = sshll.u32 %s819_s18, 1 }
  0x59   : > { %s38_s11 = sor.u32 %s37_s28, %s36_s10  ;;  %s183_s21 = sadd.s32 %s815_s17, %s472_s27 }
  0x5a   : > { %p39_p13 = scmp.eq.s32.totalorder %s38_s11, 0  ;;  %s473_s26 = sshll.u32 %s183_s21, 6 }
  0x5b   : > { %s178_s29 = scalar_lea.vmem [#allocation2], %s471_s9  ;;  %s1013_s24 = scalar_lea.hbm %s1129_s0, %s473_s26 }
  0x5c   : > { %s187_s4 = sshll.u32 %s178_s29, 4  ;;  %p1021_p0 = pnand %p551_p12, %p995_p7  ;;  %s1015_s4 = int_to_ptr.vmem [resolvable:$true] %s187_s4 }
  0x5d   : > { %s1008_s1 = scalar_select %p39_p13, %s803_s14, %s41_s7  }
  0x5e   : > { %s175_s7 = scalar_lea.sflag [#allocation3], %s174_s8  ;;  %s691_s9 = scalar_lea.hbm %s1013_s24, 64 }
  0x5f   : > { %p692_p2 = scmp.ne.s32.totalorder %s1013_s24, %s691_s9  ;;  %p693_p4 = pneg %p1021_p0 }
  0x60   : > { %s696_s20 = scalar_lea.hbm %s1129_s0, 256  ;;  %p697_p11 = scmp.lt.u32.totalorder %s1013_s24, %s1129_s0 }
  0x61   : > { %p694_p6 = pnand %p693_p4, %p692_p2  ;;  %p698_p10 = scmp.lt.u32.totalorder %s696_s20, %s691_s9 }
  0x62   : > { %p700_p3 = scmp.lt.u32.totalorder %s691_s9, %s1013_s24 }
  0x63   : > { %p695_p8 = pneg %p694_p6  ;;  %p699_p1 = por %p698_p10, %p697_p11 }
  0x65   : > { %p701_p5 = por %p700_p3, %p699_p1 }
  0x67   : > { %p702_p7 = pnand %p701_p5, %p695_p8 }
  0x69   : > { %705 = shalt.err (!%p702_p7)
}
  0x6a   : > { %s706_s8 = scalar_lea.vmem %s1015_s4, 64  ;;  %s831_s27 = smov [#allocation2]  }
  0x6b   : > { %p707_p12 = scmp.ne.s32.totalorder %s1015_s4, %s706_s8  ;;  %s711_s21 = sshll.u32 %s831_s27, 4  ;;  %s712_s21 = int_to_ptr.vmem [resolvable:$false] %s711_s21 }
  0x6c   : > { %s713_s26 = scalar_lea.vmem %s712_s21, 128  ;;  %p714_p6 = scmp.lt.s32.totalorder %s1015_s4, %s712_s21 }
  0x6d   : > { %p709_p13 = pnand %p707_p12, %p693_p4  ;;  %p715_p11 = scmp.lt.s32.totalorder %s713_s26, %s706_s8 }
  0x6f   : > { %p710_p2 = pneg %p709_p13  ;;  %p716_p10 = por %p715_p11, %p714_p6 }
  0x71   : > { %p717_p1 = pnand %p716_p10, %p710_p2 }
  0x73   : > { %720 = shalt.err (!%p717_p1)
}
  0x74   : > { %544 = dma.hbm_to_vmem [thread:$0]  (!%p1021_p0), %s1013_s24, 64, %s1015_s4, %s175_s7  }
  0x75   : > { %p1153_p8 = scmp.ne.s32.totalorder %s1145_s25, 0 }
  0x76   : > { %s1053_s29 = sand.u32 (!%p1153_p8), 1, %s799_s13   ;;  %p1154_p4 = scmp.ne.s32.totalorder (!%p1153_p8), %s1142_s23, 0 }
  0x77   : > { %196 = sbr.rel (%p1153_p8) target bundleno = 391 (0x187), region = 32  ;;  %s475_s9 = sshll.u32 (!%p1153_p8), %s1053_s29, 2 }
  0x78   : > { %s199_s2 = scalar_lea.sflag (!%p1153_p8), [#allocation3], %s1053_s29  ;;  %s1057_s5 = scalar_lea.vmem (!%p1153_p8), [#allocation2], %s475_s9 }
  0x7e   : > { %782 = dma.done.wait (%p1154_p4), %s199_s2, 64  }
  0x7f   : > { %784 = vsyncadd (%p1154_p4), %s199_s2, 4294967232  ;;  %p1155_p0 = scmp.ne.s32.totalorder %s1141_s22, 0 }
  0x81   : > { %786 = dma.done.wait (%p1155_p0), [#allocation6], 1280  }
  0x82   : > { %788 = vsyncadd (%p1155_p0), [#allocation6], 4294966016  ;;  %v832_v0 = vmov 0.0   ;;  %vm833_vm0 = vmmov 0   ;;  %v627_v1 = vld [vmem:[#allocation5] sm:$0xff]   ;;  %v628_v2 = vld [vmem:[#allocation5 + $0x8] sm:$0xff]  }
  0x83   : > { %502 = vmatprep.subr.bf16.mxu0 %v832_v0  ;;  %518 = vmatprep.mubr.msk.bf16.mxu0 %vm833_vm0, %v832_v0  ;;  %v629_v3 = vld [vmem:[#allocation5 + $0x10] sm:$0xff]   ;;  %v630_v4 = vld [vmem:[#allocation5 + $0x18] sm:$0xff]   ;;  %v631_v5 = vld [vmem:[#allocation5 + $0x20] sm:$0xff]   ;;  %s478_s22 = sshll.u32 %s1053_s29, 3  ;;  %s479_s23 = sshll.u32 %s807_s15, 3 }
  0x84   : > { %503 = vmatpush3.bf16.msra.mxu0 %v627_v1  ;;  %v632_v6 = vld [vmem:[#allocation5 + $0x28] sm:$0xff]   ;;  %v633_v7 = vld [vmem:[#allocation5 + $0x30] sm:$0xff]   ;;  %v634_v8 = vld [vmem:[#allocation5 + $0x38] sm:$0xff]   ;;  %s489_s24 = sshll.u32 %s811_s16, 1  ;;  %s252_s4 = scalar_lea.vmem [#allocation7], %s479_s23 }
  0x85   : > { %504 = vmatprep.subr.bf16.mxu0 %v832_v0  ;;  %v234_v9 = vld [vmem:[%s1057_s5] sm:$0xf]  ;;  %s355_s25 = sadd.s32 %s807_s15, %s489_s24  ;;  %s232_s7 = scalar_lea.vmem [#allocation8], %s478_s22 }
  0x86   : > { %v253_v10 = vld [vmem:[%s252_s4] sm:$0xff]  ;;  %s490_s28 = sshll.u32 %s355_s25, 7  ;;  %s359_s20 = sshll.u32 %s232_s7, 4  ;;  %s1077_s20 = int_to_ptr.vmem [resolvable:$true] %s359_s20 }
  0x87   : > { %s1075_s8 = scalar_lea.hbm %s1132_s3, %s490_s28  ;;  %s344_s15 = scalar_lea.sflag [#allocation4], %s1053_s29 }
  0x88   : > { %505 = vmatpush3.bf16.msra.mxu0 %v628_v2  ;;  %s721_s16 = scalar_lea.vmem %s1077_s20, 128  ;;  %s834_s27 = smov [#allocation8]  }
  0x89   : > { %506 = vmatprep.subr.bf16.mxu0 %v832_v0  ;;  %p722_p3 = scmp.ne.s32.totalorder %s1077_s20, %s721_s16  ;;  %s725_s21 = sshll.u32 %s834_s27, 4  ;;  %s726_s21 = int_to_ptr.vmem [resolvable:$false] %s725_s21 }
  0x8a   : > { %s727_s26 = scalar_lea.vmem %s726_s21, 256  ;;  %p728_p12 = scmp.lt.s32.totalorder %s1077_s20, %s726_s21 }
  0x8b   : > { %p723_p5 = pnand %p722_p3, %p991_p9  ;;  %p729_p13 = scmp.lt.s32.totalorder %s727_s26, %s721_s16 }
  0x8c   : > { %507 = vmatpush3.bf16.msra.mxu0 %v629_v3 }
  0x8d   : > { %508 = vmatprep.subr.bf16.mxu0 %v832_v0  ;;  %p724_p7 = pneg %p723_p5  ;;  %p730_p2 = por %p729_p13, %p728_p12 }
  0x8f   : > { %p731_p6 = pnand %p730_p2, %p724_p7 }
  0x90   : > { %509 = vmatpush3.bf16.msra.mxu0 %v630_v4 }
  0x91   : > { %510 = vmatprep.subr.bf16.mxu0 %v832_v0 }
  0x94   : > { %511 = vmatpush3.bf16.msra.mxu0 %v631_v5 }
  0x95   : > { %512 = vmatprep.subr.bf16.mxu0 %v832_v0 }
  0x98   : > { %513 = vmatpush3.bf16.msra.mxu0 %v632_v6 }
  0x99   : > { %514 = vmatprep.subr.bf16.mxu0 %v832_v0 }
  0x9c   : > { %515 = vmatpush3.bf16.msra.mxu0 %v633_v7 }
  0x9d   : > { %516 = vmatprep.subr.bf16.mxu0 %v832_v0 }
  0xa0   : > { %517 = vmatpush3.bf16.msra.mxu0 %v634_v8 }
  0xa3   : > { %519 = vmatmul.mubr.bf16.vlgmr.msra.gmra.mrb[0].mxu0 %v234_v9 }
 0x176   : > { %v336_v11 = vpop.f32.mrb[0].mxu0 }
 0x177   : > { %v337_v12 = vadd.f32 %v336_v11, %v253_v10  ;;  %v520_v13 = vpop.f32.mrb[1].mxu0 }
 0x178   : > { %v339_v14 = vpop.f32.mrb[2].mxu0 }
 0x179   : > { %342 = vst [vmem:[%s232_s7] sm:$0xff] %v337_v12  ;;  %v521_v15 = vpop.f32.mrb[3].mxu0 }
 0x17a   : > { %734 = shalt.err (!%p731_p6)
}
 0x17b   : > { %s735_s29 = scalar_lea.hbm %s1075_s8, 128  ;;  %s739_s5 = scalar_lea.hbm %s1132_s3, 512 }
 0x17c   : > { %p736_p11 = scmp.ne.s32.totalorder %s1075_s8, %s735_s29  ;;  %p740_p8 = scmp.lt.u32.totalorder %s1075_s8, %s1132_s3 }
 0x17d   : > { %p741_p4 = scmp.lt.u32.totalorder %s739_s5, %s735_s29  ;;  %p743_p3 = scmp.lt.u32.totalorder %s735_s29, %s1075_s8 }
 0x17e   : > { %p737_p10 = pnand %p736_p11, %p991_p9 }
 0x17f   : > { %p742_p0 = por %p741_p4, %p740_p8 }
 0x180   : > { %p738_p1 = pneg %p737_p10 }
 0x181   : > { %p744_p5 = por %p743_p3, %p742_p0 }
 0x183   : > { %p745_p7 = pnand %p744_p5, %p738_p1 }
 0x185   : > { %748 = shalt.err (!%p745_p7)
}
 0x186   : > { %532 = dma.vmem_to_hbm [thread:$0]  (%p991_p9), %s1077_s20, 128, %s1075_s8, %s344_s15  }
 0x187 PF: > { %s1156_s24 = sld [smem:[#allocation12_spill]]  ;;  %p554_p12 = scmp.ge.s32.totalorder %s823_s19, 2 }
 0x188   : > { %s371_s25 = sand.u32 1, %s795_s12  }
 0x189   : > { %s372_s4 = scalar_lea.sflag [#allocation4], %s371_s25 }
 0x18d   : > { %p1157_p13 = scmp.ne.s32.totalorder %s1156_s24, 0 }
 0x18f   : > { %p546_p2 = pnand %p554_p12, %p1157_p13 }
 0x191   : > { %790 = dma.done.wait (!%p546_p2), %s372_s4, 128  }
 0x192   : > { %792 = vsyncadd (!%p546_p2), %s372_s4, 4294967168  ;;  %s20_s19 = sadd.s32 1, %s823_s19   ;;  %s1158_s30 = sld [smem:[#allocation13_spill]] }
 0x193   : > { %p17_p6 = scmp.ge.s32.totalorder %s20_s19, 6   ;;  %s1159_s12 = smov %s799_s13 }
 0x194   : > { %s1160_s13 = smov %s803_s14  ;;  %s1161_s14 = smov %s1008_s1 }
 0x195   : > { %s1162_s15 = smov %s815_s17  ;;  %s1163_s16 = smov %s819_s18 }
 0x196   : > { %s1165_s18 = smov %s1171_s6  ;;  %19 = sbr.rel (!%p17_p6) target bundleno = 11 (0xb), region = 86 }
 0x198   : > { %s1164_s17 = smov %s1158_s30 }
 0x19d   :  { %377 = vsyncpa [#allocation3], 1 }
 0x19e   :  { %379 = vsyncpa [#allocation3 + $0x1], 1 }
 0x19f   :  { %380 = vsyncpa [#allocation6], 1 }
 0x1a0   :  { %381 = vsyncpa [#allocation4], 1 }
 0x1a1   :  { %383 = vsyncpa [#allocation4 + $0x1], 1 }

</bundles_post_ra>
